<compile_context>
chip_gen: v7x
topology: tpu7x:2x2x1
jax: 0.10.0
libtpu: 0.0.40
codegen_flags: <defaults>
</compile_context>

<pallas_src>
import functools

import jax
import jax.numpy as jnp
from jax.experimental import pallas as pl
from jax.experimental.pallas import tpu as pltpu

GAMMA = 1.5
ALPHA = 0.25
LANES = 128
MAX_BLOCK_ROWS = 1024          # (1024,128) f32 = 512 KiB per input block
NUM_SHARDS = 2                 # leading "parallel" grid axis (v7x megacore)

# Padding logit: exp(-|x|) underflows to exactly 0 in f32/bf16, so
#   bce = max(x,0) - x*0 + log1p(0) = 0   and   mod = (1 - p_t)^g = 0
# => padded elements contribute exactly 0 to the sum (no masking needed).
NEUTRAL_LOGIT = -1.0e4


def _cdiv(a, b):
    return -(-a // b)


def _round_up(a, b):
    return _cdiv(a, b) * b


def _focal_terms(x, y, gamma, alpha):
    """Elementwise focal-modulated BCE-with-logits (reduction='none')."""
    x = x.astype(jnp.float32)
    y = y.astype(jnp.float32)

    # One exp per element, reused by both the BCE log term and the sigmoid.
    e = jnp.exp(-jnp.abs(x))                          # exp(-|x|) in (0, 1]

    # Numerically-stable BCEWithLogitsLoss: max(x,0) - x*y + log(1 + exp(-|x|))
    bce = jnp.maximum(x, 0.0) - x * y + jnp.log1p(e)

    # sigmoid(x) from e:  x >= 0 -> 1/(1+e),   x < 0 -> e/(1+e)
    # Approx EUP reciprocal + one Newton step (inv*(2 - d*inv)): ~1e-7 rel err,
    # cheaper on the VALU than the exact f32 divide.
    d = 1.0 + e
    inv_d = pl.reciprocal(d, approx=True)
    inv_d = inv_d * (2.0 - d * inv_d)
    sig = jnp.where(x >= 0.0, 1.0, e) * inv_d

    # General soft-label blend (matches the PyTorch module for any `true`).
    p_t = y * sig + (1.0 - y) * (1.0 - sig)
    alpha_factor = y * alpha + (1.0 - y) * (1.0 - alpha)

    z = 1.0 - p_t
    g = float(gamma)
    if g == 1.5:
        # z**1.5 == z*sqrt(z): 1 EUP sqrt + 1 VPU mul instead of exp+log pow.
        mod = z * jnp.sqrt(z)
    elif g == float(int(g)) and 0.0 <= g <= 4.0:
        mod = z ** int(g)          # small integer pow -> repeated multiplies
    else:
        mod = z ** g               # general fallback (exp/log pow)
    return bce * alpha_factor * mod


def _focal_single_block_kernel(pred_ref, true_ref, out_ref, *, gamma, alpha,
                               inv_n):
    # Whole problem in one block: elementwise math, one reduce, scaled store.
    loss = _focal_terms(pred_ref[...], true_ref[...], gamma, alpha)
    out_ref[...] = jnp.sum(loss, keepdims=True) * inv_n


def _focal_tiled_kernel(pred_ref, true_ref, out_ref, acc_ref, *, gamma, alpha,
                        inv_n):
    j = pl.program_id(1)

    @pl.when(j == 0)
    def _init():
        acc_ref[...] = jnp.zeros_like(acc_ref)

    # Vector accumulator: one VPU vreg add per step; the XLU reduce happens
    # only once per shard in the finalize branch.
    acc_ref[...] += _focal_terms(pred_ref[...], true_ref[...], gamma, alpha)

    @pl.when(j == pl.num_programs(1) - 1)
    def _finalize():
        # Per-lane partial sums for this shard, pre-scaled by 1/N.
        out_ref[...] = jnp.sum(acc_ref[...], axis=0, keepdims=True) * inv_n


def _pad_flat(flat, target_len, fill):
    if flat.shape[0] == target_len:
        return flat
    return jnp.pad(flat, (0, target_len - flat.shape[0]),
                   constant_values=fill)


def focal_loss(pred, true, gamma=GAMMA, alpha=ALPHA):
    """FocalLoss(BCEWithLogitsLoss(reduction='mean')) forward pass."""
    # TODO(synk): only the 'mean' reduction (BCEWithLogitsLoss default) is
    # implemented; 'sum' would just drop the 1/N scale, 'none' needs a full
    # elementwise output.
    assert pred.shape == true.shape
    n = int(pred.size)
    assert n > 0
    inv_n = 1.0 / float(n)

    rows = _cdiv(n, LANES)
    pred_flat = pred.reshape(-1)
    true_flat = true.reshape(-1)

    itemsize = pred.dtype.itemsize + true.dtype.itemsize
    cost = pl.CostEstimate(flops=22 * n, transcendentals=4 * n,
                           bytes_accessed=itemsize * n + 4)

    if rows <= MAX_BLOCK_ROWS:
        # --- Single-block fast path (used for the (2,4,16,16) test size). ---
        block_rows = max(8, _round_up(rows, 8))
        padded_len = block_rows * LANES
        pred2d = _pad_flat(pred_flat, padded_len,
                           NEUTRAL_LOGIT).reshape(block_rows, LANES)
        true2d = _pad_flat(true_flat, padded_len,
                           0).reshape(block_rows, LANES)

        kernel = functools.partial(_focal_single_block_kernel, gamma=gamma,
                                   alpha=alpha, inv_n=inv_n)
        out = pl.pallas_call(
            kernel,
            out_shape=jax.ShapeDtypeStruct((1, 1), jnp.float32),
            grid_spec=pltpu.PrefetchScalarGridSpec(
                num_scalar_prefetch=0,
                grid=(1,),
                in_specs=[
                    pl.BlockSpec((block_rows, LANES), lambda i: (0, 0)),
                    pl.BlockSpec((block_rows, LANES), lambda i: (0, 0)),
                ],
                out_specs=pl.BlockSpec((1, 1), lambda i: (0, 0)),
                scratch_shapes=[]),
            compiler_params=pltpu.CompilerParams(
                dimension_semantics=("arbitrary",)),
            cost_estimate=cost,
        )(pred2d, true2d)
        return out[0, 0]

    # --- Tiled streaming path for large inputs. ---
    block_rows = MAX_BLOCK_ROWS
    blocks_total = _cdiv(rows, block_rows)
    blocks_per_shard = _cdiv(blocks_total, NUM_SHARDS)
    rows_padded = NUM_SHARDS * blocks_per_shard * block_rows
    padded_len = rows_padded * LANES

    # Padding (when needed) costs one extra HBM pass in the wrapper but keeps
    # full-size blocks for every input size (no divisor perf cliff) and needs
    # no in-kernel masking (neutral padding contributes exactly 0).
    pred2d = _pad_flat(pred_flat, padded_len,
                       NEUTRAL_LOGIT).reshape(rows_padded, LANES)
    true2d = _pad_flat(true_flat, padded_len, 0).reshape(rows_padded, LANES)

    def in_map(c, j, _bps=blocks_per_shard):
        return (c * _bps + j, 0)

    kernel = functools.partial(_focal_tiled_kernel, gamma=gamma, alpha=alpha,
                               inv_n=inv_n)
    out = pl.pallas_call(
        kernel,
        # Lane-dense per-shard partials: (1, NUM_SHARDS*128).
        out_shape=jax.ShapeDtypeStruct((1, NUM_SHARDS * LANES), jnp.float32),
        grid_spec=pltpu.PrefetchScalarGridSpec(
            num_scalar_prefetch=0,
            grid=(NUM_SHARDS, blocks_per_shard),
            in_specs=[
                pl.BlockSpec((block_rows, LANES), in_map,
                             pipeline_mode=pl.Buffered(3)),
                pl.BlockSpec((block_rows, LANES), in_map,
                             pipeline_mode=pl.Buffered(3)),
            ],
            out_specs=pl.BlockSpec((1, LANES), lambda c, j: (0, c)),
            scratch_shapes=[pltpu.VMEM((block_rows, LANES), jnp.float32)]),
        compiler_params=pltpu.CompilerParams(
            dimension_semantics=("parallel", "arbitrary")),
        cost_estimate=cost,
    )(pred2d, true2d)
    # Sum of per-lane, per-shard partials (already scaled by 1/N) = mean.
    return jnp.sum(out)


def focal_loss_ref(pred, true, gamma=GAMMA, alpha=ALPHA):
    """Pure-JAX reference, written the 'standard' way (independent of kernel)."""
    x = pred.astype(jnp.float32)
    y = true.astype(jnp.float32)
    bce = jnp.maximum(x, 0.0) - x * y + jnp.log1p(jnp.exp(-jnp.abs(x)))
    p = jax.nn.sigmoid(x)
    p_t = y * p + (1 - y) * (1 - p)
    af = y * alpha + (1 - y) * (1 - alpha)
    mf = (1.0 - p_t) ** gamma
    return jnp.mean(bce * af * mf)


if __name__ == "__main__":
    key = jax.random.PRNGKey(0)
    k1, k2, k3, k4 = jax.random.split(key, 4)

    # Primary test: NCHW logits / binary targets at (2, 4, 16, 16)
    # -> 2048 elems -> single-block fast path.
    pred = jax.random.normal(k1, (2, 4, 16, 16), dtype=jnp.float32)
    true = (jax.random.uniform(k2, (2, 4, 16, 16)) > 0.5).astype(jnp.float32)
    out = jax.block_until_ready(focal_loss(pred, true))
    ref = focal_loss_ref(pred, true)
    assert jnp.allclose(out, ref, rtol=1e-5, atol=1e-6), (out, ref)

    # Secondary test: ragged size (not a multiple of 1024*128) -> exercises the
    # tiled 2-shard path with neutral tail padding.
    pred_l = jax.random.normal(k3, (2, 4, 131, 143), dtype=jnp.float32)
    true_l = (jax.random.uniform(k4, (2, 4, 131, 143)) > 0.5).astype(jnp.float32)
    out_l = jax.block_until_ready(focal_loss(pred_l, true_l))
    ref_l = focal_loss_ref(pred_l, true_l)
    assert jnp.allclose(out_l, ref_l, rtol=5e-5, atol=1e-6), (out_l, ref_l)

    print("KERNEL_OK")
</pallas_src>

<mosaic_0001>
module attributes {stable_mosaic.version = 11 : i64} {
  func.func @_focal_single_block_kernel(%arg0: i32, %arg1: memref<16x128xf32, #tpu.memory_space<vmem>>, %arg2: memref<16x128xf32, #tpu.memory_space<vmem>>, %arg3: memref<1x1xf32, #tpu.memory_space<vmem>>) attributes {dimension_semantics = [#tpu.dimension_semantics<arbitrary>], iteration_bounds = array<i64: 1>, scalar_prefetch = 0 : i64, scratch_operands = 0 : i64, tpu.core_type = #tpu.core_type<tc>, window_params = [{pipeline_mode = #tpu.pipeline_mode<synchronous>, transform_indices = @transform_0, window_bounds = array<i64: 16, 128>}, {pipeline_mode = #tpu.pipeline_mode<synchronous>, transform_indices = @transform_1, window_bounds = array<i64: 16, 128>}, {pipeline_mode = #tpu.pipeline_mode<synchronous>, transform_indices = @transform_2, window_bounds = array<i64: 1, 1>}]} {
    %c0 = arith.constant 0 : index
    %c0_0 = arith.constant 0 : index
    %0 = vector.load %arg1[%c0, %c0_0] : memref<16x128xf32, #tpu.memory_space<vmem>>, vector<16x128xf32>
    %c0_1 = arith.constant 0 : index
    %c0_2 = arith.constant 0 : index
    %1 = vector.load %arg2[%c0_1, %c0_2] : memref<16x128xf32, #tpu.memory_space<vmem>>, vector<16x128xf32>
    %2 = math.absf %0 : vector<16x128xf32>
    %cst = arith.constant 0.000000e+00 : f32
    %3 = vector.broadcast %cst : f32 to vector<16x128xf32>
    %4 = arith.subf %3, %2 : vector<16x128xf32>
    %5 = math.exp %4 : vector<16x128xf32>
    %cst_3 = arith.constant 0.000000e+00 : f32
    %6 = vector.broadcast %cst_3 : f32 to vector<16x128xf32>
    %7 = arith.maximumf %0, %6 : vector<16x128xf32>
    %8 = arith.mulf %0, %1 : vector<16x128xf32>
    %9 = arith.subf %7, %8 : vector<16x128xf32>
    %10 = math.log1p %5 : vector<16x128xf32>
    %11 = arith.addf %9, %10 : vector<16x128xf32>
    %cst_4 = arith.constant 1.000000e+00 : f32
    %12 = vector.broadcast %cst_4 : f32 to vector<16x128xf32>
    %13 = arith.addf %12, %5 : vector<16x128xf32>
    %14 = tpu.reciprocal %13 {approx = true} : vector<16x128xf32> -> vector<16x128xf32>
    %15 = arith.mulf %13, %14 : vector<16x128xf32>
    %cst_5 = arith.constant 2.000000e+00 : f32
    %16 = vector.broadcast %cst_5 : f32 to vector<16x128xf32>
    %17 = arith.subf %16, %15 : vector<16x128xf32>
    %18 = arith.mulf %14, %17 : vector<16x128xf32>
    %cst_6 = arith.constant 0.000000e+00 : f32
    %19 = vector.broadcast %cst_6 : f32 to vector<16x128xf32>
    %20 = arith.cmpf oge, %0, %19 : vector<16x128xf32>
    %cst_7 = arith.constant 1.000000e+00 : f32
    %21 = vector.broadcast %cst_7 : f32 to vector<16x128xf32>
    %22 = arith.select %20, %21, %5 : vector<16x128xi1>, vector<16x128xf32>
    %23 = arith.mulf %22, %18 : vector<16x128xf32>
    %24 = arith.mulf %1, %23 : vector<16x128xf32>
    %cst_8 = arith.constant 1.000000e+00 : f32
    %25 = vector.broadcast %cst_8 : f32 to vector<16x128xf32>
    %26 = arith.subf %25, %1 : vector<16x128xf32>
    %cst_9 = arith.constant 1.000000e+00 : f32
    %27 = vector.broadcast %cst_9 : f32 to vector<16x128xf32>
    %28 = arith.subf %27, %23 : vector<16x128xf32>
    %29 = arith.mulf %26, %28 : vector<16x128xf32>
    %30 = arith.addf %24, %29 : vector<16x128xf32>
    %cst_10 = arith.constant 2.500000e-01 : f32
    %31 = vector.broadcast %cst_10 : f32 to vector<16x128xf32>
    %32 = arith.mulf %1, %31 : vector<16x128xf32>
    %cst_11 = arith.constant 1.000000e+00 : f32
    %33 = vector.broadcast %cst_11 : f32 to vector<16x128xf32>
    %34 = arith.subf %33, %1 : vector<16x128xf32>
    %cst_12 = arith.constant 7.500000e-01 : f32
    %35 = vector.broadcast %cst_12 : f32 to vector<16x128xf32>
    %36 = arith.mulf %34, %35 : vector<16x128xf32>
    %37 = arith.addf %32, %36 : vector<16x128xf32>
    %cst_13 = arith.constant 1.000000e+00 : f32
    %38 = vector.broadcast %cst_13 : f32 to vector<16x128xf32>
    %39 = arith.subf %38, %30 : vector<16x128xf32>
    %40 = math.sqrt %39 : vector<16x128xf32>
    %41 = arith.mulf %39, %40 : vector<16x128xf32>
    %42 = arith.mulf %11, %37 : vector<16x128xf32>
    %43 = arith.mulf %42, %41 : vector<16x128xf32>
    %44 = vector.shape_cast %43 : vector<16x128xf32> to vector<1x16x128xf32>
    %cst_14 = arith.constant dense<0.000000e+00> : vector<1xf32>
    %45 = vector.multi_reduction <add>, %44, %cst_14 [1, 2] : vector<1x16x128xf32> to vector<1xf32>
    %46 = vector.shape_cast %45 : vector<1xf32> to vector<1x1x1xf32>
    %47 = vector.extract %46[0, 0, 0] : f32 from vector<1x1x1xf32>
    %48 = vector.broadcast %47 : f32 to vector<1x1xf32>
    %cst_15 = arith.constant 4.8828125E-4 : f32
    %49 = vector.broadcast %cst_15 : f32 to vector<1x1xf32>
    %50 = arith.mulf %48, %49 : vector<1x1xf32>
    %c0_16 = arith.constant 0 : index
    %c0_17 = arith.constant 0 : index
    %51 = vector.load %arg3[%c0_16, %c0_17] : memref<1x1xf32, #tpu.memory_space<vmem>>, vector<1x1xf32>
    tpu.vector_store %arg3[%c0_16, %c0_17], %50 {strides = array<i32>} : memref<1x1xf32, #tpu.memory_space<vmem>>, vector<1x1xf32>,
    return
  }
  func.func @transform_0(%arg0: i32) -> (i32, i32) {
    %c0_i32 = arith.constant 0 : i32
    %c0_i32_0 = arith.constant 0 : i32
    %c0_i32_1 = arith.constant 0 : i32
    return %c0_i32, %c0_i32_0 : i32, i32
  }
  func.func @transform_1(%arg0: i32) -> (i32, i32) {
    %c0_i32 = arith.constant 0 : i32
    %c0_i32_0 = arith.constant 0 : i32
    %c0_i32_1 = arith.constant 0 : i32
    return %c0_i32, %c0_i32_0 : i32, i32
  }
  func.func @transform_2(%arg0: i32) -> (i32, i32) {
    %c0_i32 = arith.constant 0 : i32
    %c0_i32_0 = arith.constant 0 : i32
    %c0_i32_1 = arith.constant 0 : i32
    return %c0_i32, %c0_i32_0 : i32, i32
  }
}

</mosaic_0001>

<bundles_post_ra>
// kernel: tpu_custom_call.1
= control target key start
LH: loop header
LB: loop body
LE: loop exit
PB: predicated region body
PF: predicated region fallthrough
CT: control target
= control target key end

     0   :  { %7 = vsyncpa [#allocation3], 0  ;;  %s325_s0 = inlined_call_operand.hbm [shape: f32[16,128], index: 0, kind: input, shape index: {}]   ;;  %s326_s1 = inlined_call_operand.hbm [shape: f32[16,128], index: 1, kind: input, shape index: {}]   ;;  %s327_s2 = inlined_call_operand.hbm [shape: f32[1,1], index: 2, kind: output, shape index: {}]  }
   0x1   :  { %8 = vsyncpa [#allocation6], 0 }
   0x2   :  { %9 = vsyncpa [#allocation4], 0  ;;  %s257_s9 = smov [#allocation2]   ;;  %s185_s13 = scalar_lea.hbm %s325_s0, 256 }
   0x3   :  { %s15_s10 = sshll.u32 %s257_s9, 4  ;;  %p186_p0 = scmp.ne.s32.totalorder %s325_s0, %s185_s13  ;;  %s16_s10 = int_to_ptr.vmem [resolvable:$true] %s15_s10 }
   0x4   :  { %p189_p1 = scmp.lt.u32.totalorder %s185_s13, %s325_s0 }
   0x6   :  { %p191_p2 = pnand %p189_p1, %p186_p0 }
   0x8   :  { %194 = shalt.err (!%p191_p2)
}
   0x9   :  { %s195_s18 = scalar_lea.vmem %s16_s10, 256  ;;  %p200_p4 = scmp.lt.s32.totalorder %s16_s10, %s16_s10 }
   0xa   :  { %p196_p3 = scmp.ne.s32.totalorder %s16_s10, %s195_s18  ;;  %p201_p5 = scmp.lt.s32.totalorder %s195_s18, %s195_s18 }
   0xc   :  { %p202_p6 = por %p201_p5, %p200_p4 }
   0xe   :  { %p203_p7 = pnand %p202_p6, %p196_p3 }
  0x10   :  { %206 = shalt.err (!%p203_p7)
}
  0x11   :  { %s258_s19 = smov 128   ;;  %s259_s20 = smov 8  }
  0x12   :  { %21 = dma.hbm_to_vmem [thread:$0]  %s325_s0, 256, %s16_s10, [#allocation3], %s258_s19, %s258_s19, %s259_s20  }
  0x13   :  { %s260_s23 = smov [#allocation5]   ;;  %s207_s27 = scalar_lea.hbm %s326_s1, 256 }
  0x14   :  { %s27_s24 = sshll.u32 %s260_s23, 4  ;;  %p208_p8 = scmp.ne.s32.totalorder %s326_s1, %s207_s27  ;;  %s28_s24 = int_to_ptr.vmem [resolvable:$true] %s27_s24 }
  0x15   :  { %p211_p9 = scmp.lt.u32.totalorder %s207_s27, %s326_s1 }
  0x17   :  { %p213_p10 = pnand %p211_p9, %p208_p8 }
  0x19   :  { %216 = shalt.err (!%p213_p10)
}
  0x1a   :  { %s217_s4 = scalar_lea.vmem %s28_s24, 256  ;;  %p222_p12 = scmp.lt.s32.totalorder %s28_s24, %s28_s24 }
  0x1b   :  { %p218_p11 = scmp.ne.s32.totalorder %s28_s24, %s217_s4  ;;  %p223_p13 = scmp.lt.s32.totalorder %s217_s4, %s217_s4 }
  0x1d   :  { %p224_p0 = por %p223_p13, %p222_p12 }
  0x1f   :  { %p225_p1 = pnand %p224_p0, %p218_p11 }
  0x21   :  { %228 = shalt.err (!%p225_p1)
}
  0x22   :  { %33 = dma.hbm_to_vmem [thread:$0]  %s326_s1, 256, %s28_s24, [#allocation6], %s258_s19, %s258_s19, %s259_s20  }
  0x23   :  { %251 = dma.done.wait [#allocation3], 256  }
  0x24   :  { %252 = vsyncadd [#allocation3], 4294967040 }
  0x25   :  { %253 = dma.done.wait [#allocation6], 256  }
  0x26   :  { %254 = vsyncadd [#allocation6], 4294967040  ;;  %v301_v0 = vld [vmem:[#allocation2] sm:$0xff]  ;;  %v303_v1 = vld [vmem:[#allocation2 + $0x8] sm:$0xff]  ;;  %s261_s1 = smov [#allocation7]   ;;  %vm144_vm8 = vcmask 0  }
  0x27   :  { %v44_v2 = vand.u32 2147483647, %v301_v0  ;;  %v45_v3 = vand.u32 2147483647, %v303_v1  ;;  %vm88_vm0 = vcmp.ge.f32.partialorder %v301_v0, 0.0  ;;  %vm89_vm1 = vcmp.ge.f32.partialorder %v303_v1, 0.0 }
  0x28   :  { %v42_v17 = vld [vmem:[#allocation5] sm:$0xff]  ;;  %v43_v20 = vld [vmem:[#allocation5 + $0x8] sm:$0xff]  ;;  %v52_v46 = vmax.f32 %v301_v0, 0.0  ;;  %v53_v48 = vmax.f32 %v303_v1, 0.0  ;;  %s152_s6 = sshll.u32 %s261_s1, 4  ;;  %s153_s6 = int_to_ptr.vmem [resolvable:$true] %s152_s6 }
  0x29   :  { %v46_v4 = vsub.f32 0.0, %v44_v2  ;;  %v47_v5 = vsub.f32 0.0, %v45_v3  ;;  %v96_v25 = vsub.f32 1.0, %v42_v17  ;;  %v97_v27 = vsub.f32 1.0, %v43_v20  ;;  %s229_s8 = scalar_lea.vmem %s153_s6, 16  ;;  %s233_s9 = scalar_lea.vmem %s153_s6, 32 }
  0x2a   :  { %v54_v47 = vmul.f32 %v42_v17, %v301_v0  ;;  %v55_v49 = vmul.f32 %v43_v20, %v303_v1  ;;  %v104_v55 = vmul.f32 0.25, %v42_v17  ;;  %v105_v59 = vmul.f32 0.25, %v43_v20  ;;  %p230_p2 = scmp.ne.s32.totalorder %s153_s6, %s229_s8  ;;  %p234_p3 = scmp.lt.s32.totalorder %s153_s6, %s153_s6 }
  0x2b   :  { %v48_v6 = vmul.f32 1.442695, %v46_v4  ;;  %v50_v7 = vmul.f32 1.442695, %v47_v5  ;;  %v106_v56 = vmul.f32 0.75, %v96_v25  ;;  %v107_v60 = vmul.f32 0.75, %v97_v27  ;;  %p235_p4 = scmp.lt.s32.totalorder %s233_s9, %s229_s8 }
  0x2c   :  { %v56_v54 = vsub.f32 %v52_v46, %v54_v47  ;;  %v57_v57 = vsub.f32 %v53_v48, %v55_v49 }
  0x2d   :  { %169 = vpow2.f32 %v48_v6  ;;  %v108_v63 = vadd.f32 %v106_v56, %v104_v55  ;;  %v109_v3 = vadd.f32 %v107_v60, %v105_v59  ;;  %p236_p5 = por %p235_p4, %p234_p3 }
  0x2e   :  { %171 = vpow2.f32 %v50_v7 }
  0x2f   :  { %p237_p6 = pnand %p236_p5, %p230_p2 }
  0x37   :  { %v170_v8 = vpop.eup %169 }
  0x38   :  { %v172_v9 = vpop.eup %171  ;;  %v58_v10 = vadd.f32 1.0, %v170_v8  ;;  %v90_v19 = vsel %vm88_vm0, 1.0, %v170_v8  ;;  %v61_v32 = vmul.f32 -0.5, %v170_v8  ;;  %v64_v41 = vand.u32 2147483647, %v170_v8 }
  0x39   :  { %v67_v11 = vadd.f32 1.0, %v172_v9  ;;  %v91_v22 = vsel %vm89_vm1, 1.0, %v172_v9  ;;  %v70_v34 = vmul.f32 -0.5, %v172_v9  ;;  %v73_v45 = vand.u32 2147483647, %v172_v9 }
  0x3a   :  { %173 = vrcp.f32 %v58_v10  ;;  %v62_v38 = vadd.f32 1.0, %v61_v32  ;;  %vm65_vm2 = vcmp.lt.f32.partialorder %v64_v41, 0.0004427343 }
  0x3b   :  { %175 = vrcp.f32 %v67_v11  ;;  %v71_v42 = vadd.f32 1.0, %v70_v34  ;;  %vm74_vm3 = vcmp.lt.f32.partialorder %v73_v45, 0.0004427343 }
  0x3c   :  { %177 = vlog2.f32 %v58_v10  ;;  %v63_v51 = vmul.f32 %v170_v8, %v62_v38 }
  0x3d   :  { %179 = vlog2.f32 %v67_v11  ;;  %v72_v53 = vmul.f32 %v172_v9, %v71_v42 }
  0x44   :  { %v174_v12 = vpop.eup %173 }
  0x45   :  { %v176_v13 = vpop.eup %175  ;;  %v82_v14 = vmul.f32 %v174_v12, %v58_v10 }
  0x46   :  { %v83_v15 = vmul.f32 %v176_v13, %v67_v11  ;;  %v178_v40 = vpop.eup %177 }
  0x47   :  { %v84_v16 = vsub.f32 2.0, %v82_v14  ;;  %v180_v44 = vpop.eup %179  ;;  %v60_v50 = vmul.f32 0.6931472, %v178_v40 }
  0x48   :  { %v85_v18 = vsub.f32 2.0, %v83_v15  ;;  %v69_v52 = vmul.f32 0.6931472, %v180_v44 }
  0x49   :  { %v86_v21 = vmul.f32 %v174_v12, %v84_v16  ;;  %v66_v58 = vsel %vm65_vm2, %v63_v51, %v60_v50 }
  0x4a   :  { %v87_v23 = vmul.f32 %v176_v13, %v85_v18  ;;  %v75_v61 = vsel %vm74_vm3, %v72_v53, %v69_v52  ;;  %v76_v62 = vadd.f32 %v66_v58, %v56_v54 }
  0x4b   :  { %v92_v24 = vmul.f32 %v90_v19, %v86_v21  ;;  %v77_v2 = vadd.f32 %v75_v61, %v57_v57 }
  0x4c   :  { %v93_v26 = vmul.f32 %v91_v22, %v87_v23  ;;  %v128_v9 = vmul.f32 %v108_v63, %v76_v62 }
  0x4d   :  { %v94_v28 = vmul.f32 %v92_v24, %v42_v17  ;;  %v98_v29 = vsub.f32 1.0, %v92_v24  ;;  %v129_v12 = vmul.f32 %v109_v3, %v77_v2 }
  0x4e   :  { %v95_v30 = vmul.f32 %v93_v26, %v43_v20  ;;  %v99_v31 = vsub.f32 1.0, %v93_v26 }
  0x4f   :  { %v100_v33 = vmul.f32 %v98_v29, %v96_v25 }
  0x50   :  { %v101_v35 = vmul.f32 %v99_v31, %v97_v27 }
  0x51   :  { %v102_v36 = vadd.f32 %v100_v33, %v94_v28 }
  0x52   :  { %v103_v37 = vadd.f32 %v101_v35, %v95_v30 }
  0x53   :  { %v110_v39 = vsub.f32 1.0, %v102_v36 }
  0x54   :  { %v111_v43 = vsub.f32 1.0, %v103_v37 }
  0x55   :  { %181 = vrsqrt.f32 %v110_v39  ;;  %vm114_vm4 = vcmp.eq.f32.partialorder %v110_v39, inf  ;;  %v117_v1 = vand.u32 2147483648, %v110_v39  ;;  %vm116_vm5 = vcmp.eq.f32.partialorder %v110_v39, 0.0 }
  0x56   :  { %183 = vrsqrt.f32 %v111_v43  ;;  %vm121_vm6 = vcmp.eq.f32.partialorder %v111_v43, inf  ;;  %v124_v6 = vand.u32 2147483648, %v111_v43  ;;  %vm123_vm7 = vcmp.eq.f32.partialorder %v111_v43, 0.0 }
  0x5f   :  { %v182_v0 = vpop.eup %181 }
  0x60   :  { %v184_v4 = vpop.eup %183  ;;  %v113_v5 = vmul.f32 %v182_v0, %v110_v39 }
  0x61   :  { %v120_v7 = vmul.f32 %v184_v4, %v111_v43 }
  0x62   :  { %v115_v8 = vsel %vm114_vm4, %v110_v39, %v113_v5 }
  0x63   :  { %v118_v10 = vsel %vm116_vm5, %v117_v1, %v115_v8  ;;  %v122_v11 = vsel %vm121_vm6, %v111_v43, %v120_v7 }
  0x64   :  { %v125_v13 = vsel %vm123_vm7, %v124_v6, %v122_v11  ;;  %v126_v14 = vmul.f32 %v118_v10, %v110_v39 }
  0x65   :  { %v127_v15 = vmul.f32 %v125_v13, %v111_v43 }
  0x66   :  { %v130_v16 = vmul.f32 %v128_v9, %v126_v14 }
  0x67   :  { %v131_v17 = vmul.f32 %v129_v12, %v127_v15 }
  0x69   :  { %v132_v18 = vadd.f32 %v131_v17, %v130_v16 }
  0x6b   :  { %133 = vadd.xlane.f32.xlu0 %v132_v18 }
  0xf8   :  { %v134_v19 = vpop.xlane.xlu0 %133 }
  0xf9   :  { %v135_v20 = vrot.slane %v134_v19, 4 }
  0xfb   :  { %v136_v21 = vadd.f32 %v135_v20, %v134_v19 }
  0xfd   :  { %v137_v22 = vrot.slane %v136_v21, 2 }
  0xff   :  { %v138_v23 = vadd.f32 %v137_v22, %v136_v21 }
 0x101   :  { %v139_v24 = vrot.slane %v138_v23, 1 }
 0x103   :  { %v140_v25 = vadd.f32 %v139_v24, %v138_v23 }
 0x105   :  { %162 = vpush %v140_v25 }
 0x136   :  { %s163_s7 = spop %162 }
 0x137   :  { %v142_v26 = vstv %s163_s7 }
 0x138   :  { %v143_v27 = vmul.f32 0.00048828125, %v142_v26 }
 0x13a   :  { %145 = vst.msk [vmem:[#allocation7] sm:$0x1] %vm144_vm8, %v143_v27 }
 0x13b   :  { %240 = shalt.err (!%p237_p6)
}
 0x13c   :  { %s241_s12 = scalar_lea.hbm %s327_s2, 16 }
 0x13d   :  { %p242_p7 = scmp.ne.s32.totalorder %s327_s2, %s241_s12  ;;  %p245_p8 = scmp.lt.u32.totalorder %s241_s12, %s327_s2 }
 0x13f   :  { %p247_p9 = pnand %p245_p8, %p242_p7 }
 0x141   :  { %250 = shalt.err (!%p247_p9)
}
 0x142   :  { %155 = dma.vmem_to_hbm [thread:$0]  %s153_s6, 16, %s327_s2, [#allocation4]  }
 0x143   :  { %255 = dma.done.wait [#allocation4], 16  }
 0x144   :  { %256 = vsyncadd [#allocation4], 4294967280 }
 0x145   :  { %159 = vsyncpa [#allocation3], 1 }
 0x146   :  { %160 = vsyncpa [#allocation6], 1 }
 0x147   :  { %161 = vsyncpa [#allocation4], 1 }

</bundles_post_ra>
